<compile_context>
chip_gen: v7x
topology: tpu7x:2x2x1
jax: 0.10.0
libtpu: 0.0.40
codegen_flags: <defaults>
</compile_context>

<pallas_src>
import jax
import jax.numpy as jnp
from jax.experimental import pallas as pl
from jax.experimental.pallas import tpu as pltpu


def mlp_kernel(x_ref, w1_ref, b1_ref, w2_ref, b2_ref, o_ref):
    # Hidden layer: (TM, 20) @ (20, 50) + (1, 50) -> ReLU  (f32 accumulate on MXU)
    h = jnp.dot(x_ref[...], w1_ref[...], preferred_element_type=jnp.float32)
    h = jnp.maximum(h + b1_ref[...], 0.0)
    # Output layer: (TM, 50) @ (50, 4) + (1, 4)
    out = jnp.dot(h, w2_ref[...], preferred_element_type=jnp.float32)
    o_ref[...] = (out + b2_ref[...]).astype(o_ref.dtype)


def _round_up(v, m):
    return ((v + m - 1) // m) * m


def multi_classification_net(x, w1, b1, w2, b2, *, tm=512):
    """Forward pass of MultiClassificationNet.

    x  : (B, 20) float32
    w1 : (20, 50) float32   (PyTorch fc1.weight.T)
    b1 : (50,)   float32    (PyTorch fc1.bias)
    w2 : (50, 4) float32    (PyTorch fc2.weight.T)
    b2 : (4,)    float32    (PyTorch fc2.bias)
    returns (B, 4) float32
    """
    B, f_in = x.shape
    hidden = w1.shape[1]
    n_out = w2.shape[1]

    b1_2d = b1.reshape(1, hidden)
    b2_2d = b2.reshape(1, n_out)

    # Batch tile: multiple of 8 (f32 sublane rule), capped at the (8-padded) batch.
    tm = min(tm, _round_up(B, 8))
    bp = _round_up(B, tm)
    if bp != B:
        x = jnp.pad(x, ((0, bp - B), (0, 0)))  # zero rows -> sliced off below

    grid = (bp // tm,)

    flops = 2 * bp * (f_in * hidden + hidden * n_out)
    bytes_accessed = (
        bp * (f_in + n_out) * 4                                   # x in + out
        + (f_in * hidden + hidden + hidden * n_out + n_out) * 4   # weights + biases
    )

    out = pl.pallas_call(
        mlp_kernel,
        out_shape=jax.ShapeDtypeStruct((bp, n_out), jnp.float32),
        grid=grid,
        in_specs=[
            pl.BlockSpec((tm, f_in), lambda i: (i, 0)),     # x: tiled over batch
            pl.BlockSpec((f_in, hidden), lambda i: (0, 0)), # w1: resident
            pl.BlockSpec((1, hidden), lambda i: (0, 0)),    # b1: resident
            pl.BlockSpec((hidden, n_out), lambda i: (0, 0)),# w2: resident
            pl.BlockSpec((1, n_out), lambda i: (0, 0)),     # b2: resident
        ],
        out_specs=pl.BlockSpec((tm, n_out), lambda i: (i, 0)),
        compiler_params=pltpu.CompilerParams(
            dimension_semantics=("parallel",),
        ),
        cost_estimate=pl.CostEstimate(
            flops=flops, bytes_accessed=bytes_accessed, transcendentals=0
        ),
    )(x, w1, b1_2d, w2, b2_2d)

    return out[:B]


def init_params(key):
    # Deterministic init mimicking PyTorch Linear default (uniform +/- 1/sqrt(fan_in)).
    k1, k2, k3, k4 = jax.random.split(key, 4)
    bound1 = 1.0 / jnp.sqrt(20.0)
    bound2 = 1.0 / jnp.sqrt(50.0)
    w1 = jax.random.uniform(k1, (20, 50), jnp.float32, -bound1, bound1)
    b1 = jax.random.uniform(k2, (50,), jnp.float32, -bound1, bound1)
    w2 = jax.random.uniform(k3, (50, 4), jnp.float32, -bound2, bound2)
    b2 = jax.random.uniform(k4, (4,), jnp.float32, -bound2, bound2)
    return w1, b1, w2, b2


if __name__ == "__main__":
    key = jax.random.PRNGKey(0)
    kx, kx2, kp = jax.random.split(key, 3)

    w1, b1, w2, b2 = init_params(kp)

    def ref_fwd(xx):
        return jnp.maximum(xx @ w1 + b1, 0.0) @ w2 + b2

    # Small batch (single grid step, tm shrinks to 8).
    B = 8
    x = jax.random.normal(kx, (B, 20), jnp.float32)
    out = jax.block_until_ready(multi_classification_net(x, w1, b1, w2, b2))
    assert out.shape == (B, 4)
    assert jnp.allclose(out, ref_fwd(x), atol=1e-5, rtol=1e-5)

    # Larger, non-multiple batch (exercises batch tiling, padding, multi-step grid).
    B2 = 1000
    x2 = jax.random.normal(kx2, (B2, 20), jnp.float32)
    out2 = jax.block_until_ready(multi_classification_net(x2, w1, b1, w2, b2))
    assert out2.shape == (B2, 4)
    assert jnp.allclose(out2, ref_fwd(x2), atol=1e-5, rtol=1e-5)

    print("KERNEL_OK")
</pallas_src>

<mosaic_0001>
module attributes {stable_mosaic.version = 11 : i64} {
  func.func @mlp_kernel(%arg0: i32, %arg1: memref<8x20xf32, #tpu.memory_space<vmem>>, %arg2: memref<20x50xf32, #tpu.memory_space<vmem>>, %arg3: memref<1x50xf32, #tpu.memory_space<vmem>>, %arg4: memref<50x4xf32, #tpu.memory_space<vmem>>, %arg5: memref<1x4xf32, #tpu.memory_space<vmem>>, %arg6: memref<8x4xf32, #tpu.memory_space<vmem>>) attributes {dimension_semantics = [#tpu.dimension_semantics<parallel>], iteration_bounds = array<i64: 1>, scalar_prefetch = 0 : i64, scratch_operands = 0 : i64, tpu.core_type = #tpu.core_type<tc>, window_params = [{transform_indices = @transform_0, window_bounds = array<i64: 8, 20>}, {pipeline_mode = #tpu.pipeline_mode<synchronous>, transform_indices = @transform_1, window_bounds = array<i64: 20, 50>}, {pipeline_mode = #tpu.pipeline_mode<synchronous>, transform_indices = @transform_2, window_bounds = array<i64: 1, 50>}, {pipeline_mode = #tpu.pipeline_mode<synchronous>, transform_indices = @transform_3, window_bounds = array<i64: 50, 4>}, {pipeline_mode = #tpu.pipeline_mode<synchronous>, transform_indices = @transform_4, window_bounds = array<i64: 1, 4>}, {transform_indices = @transform_5, window_bounds = array<i64: 8, 4>}]} {
    %c0 = arith.constant 0 : index
    %c0_0 = arith.constant 0 : index
    %0 = vector.load %arg1[%c0, %c0_0] : memref<8x20xf32, #tpu.memory_space<vmem>>, vector<8x20xf32>
    %c0_1 = arith.constant 0 : index
    %c0_2 = arith.constant 0 : index
    %1 = vector.load %arg2[%c0_1, %c0_2] : memref<20x50xf32, #tpu.memory_space<vmem>>, vector<20x50xf32>
    %cst = arith.constant dense<0.000000e+00> : vector<8x50xf32>
    %2 = tpu.matmul %0, %1, %cst {dimension_numbers = #tpu.dot_dimension_numbers<[1], [0], [0], [1], [0, 0, 1, 1], [], []>} : vector<8x20xf32>, vector<20x50xf32>, vector<8x50xf32> -> vector<8x50xf32>
    %c0_3 = arith.constant 0 : index
    %c0_4 = arith.constant 0 : index
    %3 = vector.load %arg3[%c0_3, %c0_4] : memref<1x50xf32, #tpu.memory_space<vmem>>, vector<1x50xf32>
    %4 = vector.broadcast %3 : vector<1x50xf32> to vector<8x50xf32>
    %5 = arith.addf %2, %4 : vector<8x50xf32>
    %cst_5 = arith.constant 0.000000e+00 : f32
    %6 = vector.broadcast %cst_5 : f32 to vector<8x50xf32>
    %7 = arith.maximumf %5, %6 : vector<8x50xf32>
    %c0_6 = arith.constant 0 : index
    %c0_7 = arith.constant 0 : index
    %8 = vector.load %arg4[%c0_6, %c0_7] : memref<50x4xf32, #tpu.memory_space<vmem>>, vector<50x4xf32>
    %cst_8 = arith.constant dense<0.000000e+00> : vector<8x4xf32>
    %9 = tpu.matmul %7, %8, %cst_8 {dimension_numbers = #tpu.dot_dimension_numbers<[1], [0], [0], [1], [0, 0, 1, 1], [], []>} : vector<8x50xf32>, vector<50x4xf32>, vector<8x4xf32> -> vector<8x4xf32>
    %c0_9 = arith.constant 0 : index
    %c0_10 = arith.constant 0 : index
    %10 = vector.load %arg5[%c0_9, %c0_10] : memref<1x4xf32, #tpu.memory_space<vmem>>, vector<1x4xf32>
    %11 = vector.broadcast %10 : vector<1x4xf32> to vector<8x4xf32>
    %12 = arith.addf %9, %11 : vector<8x4xf32>
    %c0_11 = arith.constant 0 : index
    %c0_12 = arith.constant 0 : index
    %13 = vector.load %arg6[%c0_11, %c0_12] : memref<8x4xf32, #tpu.memory_space<vmem>>, vector<8x4xf32>
    tpu.vector_store %arg6[%c0_11, %c0_12], %12 {strides = array<i32>} : memref<8x4xf32, #tpu.memory_space<vmem>>, vector<8x4xf32>,
    return
  }
  func.func @transform_0(%arg0: i32) -> (i32, i32) {
    %c0_i32 = arith.constant 0 : i32
    %c0_i32_0 = arith.constant 0 : i32
    return %arg0, %c0_i32 : i32, i32
  }
  func.func @transform_1(%arg0: i32) -> (i32, i32) {
    %c0_i32 = arith.constant 0 : i32
    %c0_i32_0 = arith.constant 0 : i32
    %c0_i32_1 = arith.constant 0 : i32
    return %c0_i32, %c0_i32_0 : i32, i32
  }
  func.func @transform_2(%arg0: i32) -> (i32, i32) {
    %c0_i32 = arith.constant 0 : i32
    %c0_i32_0 = arith.constant 0 : i32
    %c0_i32_1 = arith.constant 0 : i32
    return %c0_i32, %c0_i32_0 : i32, i32
  }
  func.func @transform_3(%arg0: i32) -> (i32, i32) {
    %c0_i32 = arith.constant 0 : i32
    %c0_i32_0 = arith.constant 0 : i32
    %c0_i32_1 = arith.constant 0 : i32
    return %c0_i32, %c0_i32_0 : i32, i32
  }
  func.func @transform_4(%arg0: i32) -> (i32, i32) {
    %c0_i32 = arith.constant 0 : i32
    %c0_i32_0 = arith.constant 0 : i32
    %c0_i32_1 = arith.constant 0 : i32
    return %c0_i32, %c0_i32_0 : i32, i32
  }
  func.func @transform_5(%arg0: i32) -> (i32, i32) {
    %c0_i32 = arith.constant 0 : i32
    %c0_i32_0 = arith.constant 0 : i32
    return %arg0, %c0_i32 : i32, i32
  }
}

</mosaic_0001>

<bundles_post_ra>
// kernel: tpu_custom_call.1
= control target key start
LH: loop header
LB: loop body
LE: loop exit
PB: predicated region body
PF: predicated region fallthrough
CT: control target
= control target key end

     0   :  { %v267_v0 = vmov 0.0|0.0   ;;  %vm268_vm0 = vmmov 0   ;;  %v269_v3 = vmov 0.0   ;;  %vm35_vm1 = vcmask 1043456   ;;  %s342_s1 = inlined_call_operand.vmem [shape: f32[20,50], index: 1, kind: input, shape index: {}]   ;;  %s343_s3 = inlined_call_operand.vmem [shape: f32[50,4], index: 3, kind: input, shape index: {}]   ;;  %s344_s0 = inlined_call_operand.vmem [shape: f32[8,20], index: 0, kind: input, shape index: {}]   ;;  %s345_s2 = inlined_call_operand.vmem [shape: f32[1,50], index: 2, kind: input, shape index: {}]   ;;  %s346_s4 = inlined_call_operand.vmem [shape: f32[1,4], index: 4, kind: input, shape index: {}]   ;;  %s347_s5 = inlined_call_operand.vmem [shape: f32[8,4], index: 5, kind: output, shape index: {}]  }
   0x1   :  { %252 = vmatprep.subr.bf16.mxu0 %v267_v0  ;;  %v21_v1 = vld [vmem:[%s342_s1] sm:$0xff]  ;;  %v22_v2 = vld [vmem:[%s342_s1 + $0x8] sm:$0xff]  ;;  %232 = vmatprep.mubr.msk.f32.mxu0 %vm268_vm0, %v269_v3  ;;  %v112_v8 = vld [vmem:[%s343_s3 + $0x10] sm:$0xff]  ;;  %vm31_vm2 = vcmask 162816   ;;  %vm128_vm3 = vcmask 1041408   ;;  %vm124_vm4 = vcmask 408576  }
   0x2   :  { %v253_v4 = vpack.c.bf16 %v22_v2, %v21_v1  ;;  %255 = vmatprep.subr.bf16.mxu1 %v267_v0  ;;  %v110_v5 = vld [vmem:[%s343_s3] sm:$0xff]  ;;  %v111_v6 = vld [vmem:[%s343_s3 + $0x8] sm:$0xff]  ;;  %249 = vmatprep.mubr.msk.f32.mxu1 %vm268_vm0, %v269_v3  ;;  %v113_v9 = vld [vmem:[%s343_s3 + $0x18] sm:$0xff]  ;;  %vm202_vm5 = vcmask 31744  }
   0x3   :  { %v256_v7 = vpack.c.bf16 %v111_v6, %v110_v5  ;;  %v23_v10 = vld [vmem:[%s342_s1 + $0x10] sm:$0xf]  ;;  %v259_v11 = vpack.c.bf16 %v113_v9, %v112_v8  ;;  %v20_v12 = vld [vmem:[%s344_s0] sm:$0xff]  ;;  %v115_v14 = vld [vmem:[%s343_s3 + $0x28] sm:$0xff] }
   0x4   :  { %254 = vmatpush3.bf16.msra.mxu0 %v253_v4  ;;  %v114_v13 = vld [vmem:[%s343_s3 + $0x20] sm:$0xff]  ;;  %v116_v16 = vld [vmem:[%s343_s3 + $0x30] sm:$0x3] }
   0x5   :  { %230 = vmatprep.subr.mxu0 %v269_v3  ;;  %257 = vmatpush3.bf16.msra.mxu1 %v256_v7  ;;  %v262_v15 = vpack.c.bf16 %v115_v14, %v114_v13  ;;  %v208_v17 = vld [vmem:[%s345_s2] ss:$0 sm:$0xff] }
   0x6   :  { %258 = vmatprep.subr.bf16.mxu1 %v267_v0  ;;  %v211_v22 = vld [vmem:[%s346_s4] ss:$0 sm:$0xff] }
   0x8   :  { %231 = vmatpush3.msk.msra.mxu0 %vm35_vm1, %v23_v10 }
   0x9   :  { %233 = vmatmul.mubr.msk.f32.vlgmr.msra.gmra.mrb[0].mxu0 %vm31_vm2, %v20_v12  ;;  %260 = vmatpush3.bf16.msra.mxu1 %v259_v11 }
   0xa   :  { %261 = vmatprep.subr.bf16.mxu1 %v267_v0 }
   0xd   :  { %263 = vmatpush3.bf16.msra.mxu1 %v262_v15 }
   0xe   :  { %247 = vmatprep.subr.mxu1 %v269_v3 }
  0x11   :  { %248 = vmatpush3.msk.msra.mxu1 %vm128_vm3, %v116_v16 }
  0xdc   :  { %v105_v18 = vpop.f32.mrb[0].mxu0 }
  0xdd   :  { %v106_v19 = vadd.f32 %v208_v17, %v105_v18  ;;  %v234_v20 = vpop.f32.mrb[1].mxu0 }
  0xdf   :  { %v109_v21 = vmax.f32 %v106_v19, 0.0 }
  0xe1   :  { %250 = vmatmul.mubr.msk.f32.vlgmr.msra.gmra.mrb[0].mxu1 %vm124_vm4, %v109_v21 }
 0x1b4   :  { %v198_v23 = vpop.f32.mrb[0].mxu1 }
 0x1b5   :  { %v199_v24 = vadd.f32 %v211_v22, %v198_v23  ;;  %v251_v25 = vpop.f32.mrb[1].mxu1 }
 0x1b7   :  { %203 = vst.msk [vmem:[%s347_s5] sm:$0xff] %vm202_vm5, %v199_v24 }

</bundles_post_ra>
